<compile_context>
chip_gen: v5e
topology: v5e:2x2
jax: 0.10.0
libtpu: 0.0.40
codegen_flags: <defaults>
</compile_context>

<pallas_src>
import math

import jax
import jax.numpy as jnp
from jax.experimental import pallas as pl
from jax.experimental.pallas import tpu as pltpu

N_TEAMS = 64
N_ROUNDS = int(math.log2(N_TEAMS))                                # 6
SCORING = [float("nan")] + [2.0 ** rd for rd in range(0, 6)]      # [nan,1,2,4,8,16,32]
SIGMOID_STEEPNESS = 0.01
N_VALID_COLS = N_TEAMS - 1                                        # 63 bracket slots total
N_COLS = 128                                                      # packed + padded to one lane tile
# 0.5 * sum over valid slots of SCORING[rd]; exact and weight-independent (= 96.0).
SCORE_BIAS = 0.5 * sum((N_TEAMS >> rd) * SCORING[rd] for rd in range(1, N_ROUNDS + 1))


def madness_kernel(x_ref, q_ref, c_ref, ms_ref, out_ref):
    """x_ref: (TB, 64) f32; q_ref: (64, 128) bf16 (cumulative projections * 0.5k);
    c_ref/ms_ref: (1, 128) f32; out_ref: (TB//128, 128) f32, lane-dense row scores.
    score(row) = SCORE_BIAS + sum_c tanh(x@Q + C)[c] * MS[c]  (== sigmoid scoring)."""
    xb = x_ref[...].astype(jnp.bfloat16)            # cast in-kernel; no wrapper HBM pass
    z = jnp.dot(xb, q_ref[...], preferred_element_type=jnp.float32)   # (TB, 128) one MXU matmul
    t = jnp.tanh(z + c_ref[...])                    # single EUP op per element
    scores = jnp.sum(t * ms_ref[...], axis=1, keepdims=True) + SCORE_BIAS   # (TB, 1)
    out_ref[...] = scores.reshape(out_ref.shape)    # lane-dense (TB//128, 128) store


def init_params(key):
    """Deterministic replica of MadnessNet.__init__: clamp(randn(L), .4, .6)."""
    ws = []
    for rd in range(1, N_ROUNDS + 1):
        key, sub = jax.random.split(key)
        L = int(N_TEAMS * 0.5 ** rd)
        ws.append(jnp.clip(jax.random.normal(sub, (L,), jnp.float32), 0.4, 0.6))
    return ws


def build_tables(ws):
    """Host-side precompute of the fused, densely packed tables:
       Q  (64, 128) bf16: columns [cumQ_1 | cumQ_2 | ... | cumQ_6 | 0-pad] scaled by 0.5*k,
                          where cumQ_rd[j, i] = d z_rd[:, i] / d x[:, j].
       C  (1, 128)  f32 : per-column 0.5*k*(0.5 - rd), 0 in padding.
       MS (1, 128)  f32 : per-column 0.5*SCORING[rd], 0 in padding."""
    half_k = 0.5 * SIGMOID_STEEPNESS
    q_cum = jnp.eye(N_TEAMS, dtype=jnp.float32)     # bracket values for x = I
    q_blocks, c_blocks, ms_blocks = [], [], []
    for rd in range(1, N_ROUNDS + 1):
        w = jnp.clip(ws[rd - 1], 0.0, 1.0)          # forward-pass clamp of weights
        # Exact pairwise combine applied to the cumulative projection (basis vectors).
        q_cum = q_cum[:, 0::2] * w + q_cum[:, 1::2] * (1.0 - w)   # (64, L)
        L = q_cum.shape[1]
        q_blocks.append(q_cum)
        c_blocks.append(jnp.full((L,), half_k * (0.5 - rd), jnp.float32))
        ms_blocks.append(jnp.full((L,), 0.5 * float(SCORING[rd]), jnp.float32))
    q_dense = jnp.concatenate(q_blocks, axis=1)                     # (64, 63) dense
    pad = N_COLS - q_dense.shape[1]
    Q = jnp.pad(q_dense * half_k, ((0, 0), (0, pad))).astype(jnp.bfloat16)   # (64, 128)
    C = jnp.pad(jnp.concatenate(c_blocks), (0, pad))[None, :]                # (1, 128)
    MS = jnp.pad(jnp.concatenate(ms_blocks), (0, pad))[None, :]              # (1, 128)
    return Q, C, MS


def _round_up(n, m):
    return ((n + m - 1) // m) * m


def _default_batch_tile():
    """v5e is compute-leaning (weak EUP/MXU) -> smaller tile; v6e/v7x -> 8192."""
    try:
        kind = jax.devices()[0].device_kind.lower()
    except Exception:
        return 8192
    if "v5 lite" in kind or "v5e" in kind or "v5lite" in kind:
        return 4096
    return 8192


def madness_net(x, Q, C, MS, *, batch_tile=None):
    """Fused Pallas forward; returns (B,) scores matching MadnessNet.forward.
    Inference-only: Q/C/MS are baked from the clamped weights on the host."""
    B = x.shape[0]
    if batch_tile is None:
        batch_tile = _default_batch_tile()
    tb = min(batch_tile, _round_up(B, 128))         # lane-tile-aligned batch tile
    grid = pl.cdiv(B, tb)                           # ragged tail handled by Pallas masking
    rows_pad = grid * tb

    out = pl.pallas_call(
        madness_kernel,
        out_shape=jax.ShapeDtypeStruct((rows_pad // 128, 128), jnp.float32),
        grid=(grid,),
        in_specs=[
            pl.BlockSpec((tb, N_TEAMS), lambda i: (i, 0)),       # x: batch-tiled, f32 streamed
            pl.BlockSpec((N_TEAMS, N_COLS), lambda i: (0, 0)),   # Q: VMEM-resident
            pl.BlockSpec((1, N_COLS), lambda i: (0, 0)),         # C: resident
            pl.BlockSpec((1, N_COLS), lambda i: (0, 0)),         # MS: resident
        ],
        out_specs=pl.BlockSpec((tb // 128, 128), lambda i: (i, 0)),   # lane-dense output
        compiler_params=pltpu.CompilerParams(
            dimension_semantics=("parallel",),      # both v7x TCs; harmless on v5e/v6e
            vmem_limit_bytes=48 * 1024 * 1024),
    )(x, Q, C, MS)
    return out.reshape(-1)[:B]                      # drop padded / unspecified rows


def madness_reference(x, ws):
    """Pure-JAX f32 reference of MadnessNet.forward for verification."""
    z = x
    score = jnp.zeros((x.shape[0],), jnp.float32)
    for rd in range(1, N_ROUNDS + 1):
        w = jnp.clip(ws[rd - 1], 0.0, 1.0)
        z = z[:, 0::2] * w + z[:, 1::2] * (1.0 - w)
        score = score + jax.nn.sigmoid(
            SIGMOID_STEEPNESS * (z - rd + 0.5)).sum(axis=1) * SCORING[rd]
    return score


if __name__ == "__main__":
    key = jax.random.PRNGKey(0)
    k_param, k_x1, k_x2 = jax.random.split(key, 3)

    ws = init_params(k_param)
    Q, C, MS = build_tables(ws)

    # Small batch: single (partial) tile.
    B1 = 8
    x1 = jax.random.normal(k_x1, (B1, N_TEAMS), jnp.float32)
    out1 = jax.block_until_ready(madness_net(x1, Q, C, MS))
    ref1 = jax.block_until_ready(madness_reference(x1, ws))
    assert out1.shape == (B1,)
    assert jnp.allclose(out1, ref1, rtol=1e-4, atol=1e-3), (out1, ref1)

    # Multi-step grid with a ragged trailing tile (exercises cdiv path).
    B2 = 2500
    x2 = jax.random.normal(k_x2, (B2, N_TEAMS), jnp.float32)
    out2 = jax.block_until_ready(madness_net(x2, Q, C, MS, batch_tile=1024))
    ref2 = jax.block_until_ready(madness_reference(x2, ws))
    assert out2.shape == (B2,)
    assert jnp.allclose(out2, ref2, rtol=1e-4, atol=1e-3)

    print("KERNEL_OK")
</pallas_src>

<mosaic_0001>
module attributes {stable_mosaic.version = 11 : i64} {
  func.func @madness_kernel(%arg0: i32, %arg1: memref<128x64xf32, #tpu.memory_space<vmem>>, %arg2: memref<64x128xbf16, #tpu.memory_space<vmem>>, %arg3: memref<1x128xf32, #tpu.memory_space<vmem>>, %arg4: memref<1x128xf32, #tpu.memory_space<vmem>>, %arg5: memref<1x128xf32, #tpu.memory_space<vmem>>) attributes {dimension_semantics = [#tpu.dimension_semantics<parallel>], iteration_bounds = array<i64: 1>, scalar_prefetch = 0 : i64, scratch_operands = 0 : i64, tpu.core_type = #tpu.core_type<tc>, window_params = [{transform_indices = @transform_0, window_bounds = array<i64: 128, 64>}, {pipeline_mode = #tpu.pipeline_mode<synchronous>, transform_indices = @transform_1, window_bounds = array<i64: 64, 128>}, {pipeline_mode = #tpu.pipeline_mode<synchronous>, transform_indices = @transform_2, window_bounds = array<i64: 1, 128>}, {pipeline_mode = #tpu.pipeline_mode<synchronous>, transform_indices = @transform_3, window_bounds = array<i64: 1, 128>}, {transform_indices = @transform_4, window_bounds = array<i64: 1, 128>}]} {
    %c0 = arith.constant 0 : index
    %c0_0 = arith.constant 0 : index
    %0 = vector.load %arg1[%c0, %c0_0] : memref<128x64xf32, #tpu.memory_space<vmem>>, vector<128x64xf32>
    %1 = arith.truncf %0 : vector<128x64xf32> to vector<128x64xbf16>
    %c0_1 = arith.constant 0 : index
    %c0_2 = arith.constant 0 : index
    %2 = vector.load %arg2[%c0_1, %c0_2] : memref<64x128xbf16, #tpu.memory_space<vmem>>, vector<64x128xbf16>
    %cst = arith.constant dense<0.000000e+00> : vector<128x128xf32>
    %3 = tpu.matmul %1, %2, %cst {dimension_numbers = #tpu.dot_dimension_numbers<[1], [0], [0], [1], [0, 0, 1, 1], [], []>} : vector<128x64xbf16>, vector<64x128xbf16>, vector<128x128xf32> -> vector<128x128xf32>
    %c0_3 = arith.constant 0 : index
    %c0_4 = arith.constant 0 : index
    %4 = vector.load %arg3[%c0_3, %c0_4] : memref<1x128xf32, #tpu.memory_space<vmem>>, vector<1x128xf32>
    %5 = vector.broadcast %4 : vector<1x128xf32> to vector<128x128xf32>
    %6 = arith.addf %3, %5 : vector<128x128xf32>
    %7 = math.tanh %6 : vector<128x128xf32>
    %c0_5 = arith.constant 0 : index
    %c0_6 = arith.constant 0 : index
    %8 = vector.load %arg4[%c0_5, %c0_6] : memref<1x128xf32, #tpu.memory_space<vmem>>, vector<1x128xf32>
    %9 = vector.broadcast %8 : vector<1x128xf32> to vector<128x128xf32>
    %10 = arith.mulf %7, %9 : vector<128x128xf32>
    %cst_7 = arith.constant dense<0.000000e+00> : vector<128xf32>
    %11 = vector.multi_reduction <add>, %10, %cst_7 [1] : vector<128x128xf32> to vector<128xf32>
    %12 = vector.shape_cast %11 : vector<128xf32> to vector<128x1xf32>
    %cst_8 = arith.constant 9.600000e+01 : f32
    %13 = vector.broadcast %cst_8 : f32 to vector<128x1xf32>
    %14 = arith.addf %12, %13 : vector<128x1xf32>
    %15 = vector.shape_cast %14 : vector<128x1xf32> to vector<1x128xf32>
    %c0_9 = arith.constant 0 : index
    %c0_10 = arith.constant 0 : index
    %16 = vector.load %arg5[%c0_9, %c0_10] : memref<1x128xf32, #tpu.memory_space<vmem>>, vector<1x128xf32>
    tpu.vector_store %arg5[%c0_9, %c0_10], %15 {strides = array<i32>} : memref<1x128xf32, #tpu.memory_space<vmem>>, vector<1x128xf32>,
    return
  }
  func.func @transform_0(%arg0: i32) -> (i32, i32) {
    %c0_i32 = arith.constant 0 : i32
    %c0_i32_0 = arith.constant 0 : i32
    return %arg0, %c0_i32 : i32, i32
  }
  func.func @transform_1(%arg0: i32) -> (i32, i32) {
    %c0_i32 = arith.constant 0 : i32
    %c0_i32_0 = arith.constant 0 : i32
    %c0_i32_1 = arith.constant 0 : i32
    return %c0_i32, %c0_i32_0 : i32, i32
  }
  func.func @transform_2(%arg0: i32) -> (i32, i32) {
    %c0_i32 = arith.constant 0 : i32
    %c0_i32_0 = arith.constant 0 : i32
    %c0_i32_1 = arith.constant 0 : i32
    return %c0_i32, %c0_i32_0 : i32, i32
  }
  func.func @transform_3(%arg0: i32) -> (i32, i32) {
    %c0_i32 = arith.constant 0 : i32
    %c0_i32_0 = arith.constant 0 : i32
    %c0_i32_1 = arith.constant 0 : i32
    return %c0_i32, %c0_i32_0 : i32, i32
  }
  func.func @transform_4(%arg0: i32) -> (i32, i32) {
    %c0_i32 = arith.constant 0 : i32
    %c0_i32_0 = arith.constant 0 : i32
    return %arg0, %c0_i32 : i32, i32
  }
}

</mosaic_0001>

<bundles_post_ra>
// kernel: tpu_custom_call.1
= control target key start
LH: loop header
LB: loop body
LE: loop exit
PB: predicated region body
PF: predicated region fallthrough
CT: control target
= control target key end

     0   :  { %9 = vsyncpa [#allocation3], 0  ;;  %s636_s0 = inlined_call_operand.hbm [shape: f32[8,64], index: 0, kind: input, shape index: {}]   ;;  %s637_s1 = inlined_call_operand.hbm [shape: bf16[64,128], index: 1, kind: input, shape index: {}]   ;;  %s638_s2 = inlined_call_operand.vmem [shape: f32[1,128], index: 2, kind: input, shape index: {}]   ;;  %s639_s3 = inlined_call_operand.vmem [shape: f32[1,128], index: 3, kind: input, shape index: {}]   ;;  %s640_s4 = inlined_call_operand.hbm [shape: f32[1,128], index: 4, kind: output, shape index: {}]  }
   0x1   :  { %10 = vsyncpa [#allocation6], 0 }
   0x2   :  { %11 = vsyncpa [#allocation4], 0 }
   0x3   :  { %15 = vsyncadd [#allocation3], 1920  ;;  %s16_s17 = sshll.u32 %s636_s0, 4  ;;  %s527_s18 = smov [#allocation2]   ;;  %s17_s17 = int_to_ptr.hbm [resolvable:$true] %s16_s17 }
   0x4   :  { %s18_s19 = sshll.u32 %s527_s18, 4  ;;  %s29_s22 = sshll.u32 %s637_s1, 4  ;;  %s19_s19 = int_to_ptr.vmem [resolvable:$true] %s18_s19  ;;  %s30_s22 = int_to_ptr.hbm [resolvable:$true] %s29_s22 }
   0x5   :  { %s528_s23 = smov 128   ;;  %s529_s24 = smov 8  }
   0x6   :  { %24 = dma.hbm_to_vmem [thread:$0]  %s17_s17, 128, %s19_s19, [#allocation3], %s528_s23, %s528_s23, %s529_s24  }
   0x7   :  { %s530_s25 = smov [#allocation5]   ;;  %s531_s27 = smov 64  }
   0x8   :  { %s31_s26 = sshll.u32 %s530_s25, 4  ;;  %s532_s28 = smov 4   ;;  %s32_s26 = int_to_ptr.vmem [resolvable:$true] %s31_s26 }
   0x9   :  { %37 = dma.hbm_to_vmem [thread:$0]  %s30_s22, 512, %s32_s26, [#allocation6], %s531_s27, %s531_s27, %s532_s28  }
   0xa   :  { %521 = dma.done.wait [#allocation3], 2048  }
   0xb   :  { %522 = vsyncadd [#allocation3], 4294965248 }
   0xc   :  { %523 = dma.done.wait [#allocation6], 512  }
   0xd   :  { %524 = vsyncadd [#allocation6], 4294966784  ;;  %v395_v0 = vld [vmem:[#allocation5 + $0x18] sm:$0xff]  ;;  %v394_v1 = vld [vmem:[#allocation5 + $0x10] sm:$0xff]  ;;  %vm111_vm0 = vcmask 523264   ;;  %vm290_vm1 = vcmask 130112  }
   0xe   :  { %140 = vmatpush.bf16.msra.mxu0 %v395_v0  ;;  %396 = vmatpush.bf16.msra.mxu1 %v395_v0  ;;  %v393_v2 = vld [vmem:[#allocation5 + $0x8] sm:$0xff]  ;;  %v392_v3 = vld [vmem:[#allocation5] sm:$0xff]  ;;  %v53_v16 = vld [vmem:[#allocation2 + $0x10] sm:$0xff]  ;;  %vm294_vm2 = vcmask 195712   ;;  %vm298_vm3 = vcmask 261312   ;;  %vm302_vm4 = vcmask 326912  }
   0xf   :  { %397 = vmatpush.bf16.msra.mxu2 %v395_v0  ;;  %398 = vmatpush.bf16.msra.mxu3 %v395_v0  ;;  %v51_v4 = vld [vmem:[#allocation2] sm:$0xff]  ;;  %v52_v5 = vld [vmem:[#allocation2 + $0x8] sm:$0xff]  ;;  %v54_v17 = vld [vmem:[#allocation2 + $0x18] sm:$0xff]  ;;  %vm306_vm5 = vcmask 392512   ;;  %vm310_vm6 = vcmask 458112   ;;  %vm314_vm7 = vcmask 523712  }
  0x10   :  { %v55_v6 = vld [vmem:[#allocation2 + $0x20] sm:$0xff]  ;;  %v56_v7 = vld [vmem:[#allocation2 + $0x28] sm:$0xff]  ;;  %v67_v12 = vpack.c.bf16 %v52_v5, %v51_v4  ;;  %v61_v18 = vld [vmem:[#allocation2 + $0x50] sm:$0xff]  ;;  %v68_v24 = vpack.c.bf16 %v54_v17, %v53_v16  ;;  %vm318_vm8 = vcmask 589312   ;;  %vm322_vm9 = vcmask 654912   ;;  %s357_s7 = sshll.u32 %s640_s4, 4  ;;  %s358_s7 = int_to_ptr.hbm [resolvable:$true] %s357_s7 }
  0x11   :  { %v59_v8 = vld [vmem:[#allocation2 + $0x40] sm:$0xff]  ;;  %v60_v9 = vld [vmem:[#allocation2 + $0x48] sm:$0xff]  ;;  %v69_v13 = vpack.c.bf16 %v56_v7, %v55_v6  ;;  %v57_v19 = vld [vmem:[#allocation2 + $0x30] sm:$0xff]  ;;  %vm326_vm10 = vcmask 720512   ;;  %vm330_vm11 = vcmask 786112   ;;  %vm334_vm12 = vcmask 851712  }
  0x12   :  { %141 = vmatpush.bf16.msra.mxu0 %v394_v1  ;;  %399 = vmatpush.bf16.msra.mxu1 %v394_v1  ;;  %v63_v10 = vld [vmem:[#allocation2 + $0x60] sm:$0xff]  ;;  %v64_v11 = vld [vmem:[#allocation2 + $0x68] sm:$0xff]  ;;  %v71_v14 = vpack.c.bf16 %v60_v9, %v59_v8  ;;  %v58_v20 = vld [vmem:[#allocation2 + $0x38] sm:$0xff]  ;;  %vm338_vm13 = vcmask 917312   ;;  %vm342_vm14 = vcmask 982912   ;;  %vm346_vm15 = vcmask 1048512  }
  0x13   :  { %400 = vmatpush.bf16.msra.mxu2 %v394_v1  ;;  %401 = vmatpush.bf16.msra.mxu3 %v394_v1  ;;  %v73_v15 = vpack.c.bf16 %v64_v11, %v63_v10  ;;  %v62_v21 = vld [vmem:[#allocation2 + $0x58] sm:$0xff]  ;;  %v65_v22 = vld [vmem:[#allocation2 + $0x70] sm:$0xff]  ;;  %v70_v25 = vpack.c.bf16 %v58_v20, %v57_v19  ;;  %v576_v28 = vld [vmem:[%s638_s2] ss:$0 sm:$0xff]  ;;  %s533_s2 = smov [#allocation7]  }
  0x14   :  { %v66_v23 = vld [vmem:[#allocation2 + $0x78] sm:$0xff]  ;;  %v72_v26 = vpack.c.bf16 %v62_v21, %v61_v18  ;;  %v583_v33 = vld [vmem:[%s639_s3] ss:$0 sm:$0xff]  ;;  %s355_s3 = sshll.u32 %s533_s2, 4  ;;  %s356_s3 = int_to_ptr.vmem [resolvable:$true] %s355_s3 }
  0x15   :  { %v74_v27 = vpack.c.bf16 %v66_v23, %v65_v22 }
  0x16   :  { %142 = vmatpush.bf16.msra.mxu0 %v393_v2  ;;  %402 = vmatpush.bf16.msra.mxu1 %v393_v2 }
  0x17   :  { %403 = vmatpush.bf16.msra.mxu2 %v393_v2  ;;  %404 = vmatpush.bf16.msra.mxu3 %v393_v2 }
  0x1a   :  { %143 = vmatpush.bf16.msra.mxu0 %v392_v3  ;;  %405 = vmatpush.bf16.msra.mxu1 %v392_v3 }
  0x1b   :  { %406 = vmatpush.bf16.msra.mxu2 %v392_v3  ;;  %407 = vmatpush.bf16.msra.mxu3 %v392_v3 }
  0x1d   :  { %384 = vmatmul.msk.bf16.vlgmr.msra.gmra.mxu0 %vm111_vm0, %v67_v12  ;;  %386 = vmatmul.msk.bf16.vlgmr.msra.gmra.mxu1 %vm111_vm0, %v69_v13 }
  0x1e   :  { %388 = vmatmul.msk.bf16.vlgmr.msra.gmra.mxu2 %vm111_vm0, %v71_v14  ;;  %390 = vmatmul.msk.bf16.vlgmr.msra.gmra.mxu3 %vm111_vm0, %v73_v15 }
  0x2d   :  { %385 = vmatmul.msk.bf16.gmra.mxu0 %vm111_vm0, %v68_v24  ;;  %387 = vmatmul.msk.bf16.gmra.mxu1 %vm111_vm0, %v70_v25 }
  0x2e   :  { %389 = vmatmul.msk.bf16.gmra.mxu2 %vm111_vm0, %v72_v26  ;;  %391 = vmatmul.msk.bf16.gmra.mxu3 %vm111_vm0, %v74_v27 }
  0x9a   :  { %v145_v29 = vpop.f32.mrf.mxu0  ;;  %v155_v30 = vpop.f32.mrf.mxu1 }
  0x9b   :  { %v146_v31 = vadd.f32 %v576_v28, %v145_v29  ;;  %v156_v32 = vadd.f32 %v576_v28, %v155_v30 }
  0x9d   :  { %417 = vtanh.f32 %v146_v31 }
  0x9e   :  { %419 = vtanh.f32 %v156_v32 }
  0xa1   :  { %v165_v34 = vpop.f32.mrf.mxu2  ;;  %v175_v35 = vpop.f32.mrf.mxu3 }
  0xa2   :  { %v166_v36 = vadd.f32 %v576_v28, %v165_v34  ;;  %v147_v37 = vpop.f32.mrf.mxu0  ;;  %v157_v38 = vpop.f32.mrf.mxu1  ;;  %v176_v2 = vadd.f32 %v576_v28, %v175_v35 }
  0xa3   :  { %v418_v39 = vpop.eup %417  ;;  %v148_v40 = vadd.f32 %v576_v28, %v147_v37  ;;  %v158_v44 = vadd.f32 %v576_v28, %v157_v38  ;;  %v285_v37 = vlaneseq }
  0xa4   :  { %v420_v41 = vpop.eup %419  ;;  %421 = vtanh.f32 %v166_v36  ;;  %v205_v42 = vmul.f32 %v418_v39, %v583_v33 }
  0xa5   :  { %423 = vtanh.f32 %v148_v40  ;;  %v209_v43 = vmul.f32 %v420_v41, %v583_v33  ;;  %v615_v39 = vand.u32 127, %v285_v37 }
  0xa6   :  { %221 = vadd.xlane.f32.xlu0 %v205_v42  ;;  %425 = vtanh.f32 %v158_v44 }
  0xa7   :  { %229 = vadd.xlane.f32.xlu2 %v209_v43  ;;  %v288_v40 = vadd.s32 4294967288, %v615_v39  ;;  %v292_v42 = vadd.s32 4294967280, %v615_v39 }
  0xa9   :  { %v167_v45 = vpop.f32.mrf.mxu2  ;;  %v177_v46 = vpop.f32.mrf.mxu3 }
  0xaa   :  { %v422_v47 = vpop.eup %421  ;;  %v168_v48 = vadd.f32 %v576_v28, %v167_v45  ;;  %v150_v49 = vpop.f32.mrf.mxu0  ;;  %v178_v23 = vadd.f32 %v576_v28, %v177_v46 }
  0xab   :  { %v160_v50 = vpop.f32.mrf.mxu1  ;;  %v424_v51 = vpop.eup %423  ;;  %v151_v52 = vadd.f32 %v576_v28, %v150_v49  ;;  %v213_v53 = vmul.f32 %v422_v47, %v583_v33  ;;  %v296_v47 = vadd.s32 4294967272, %v615_v39 }
  0xac   :  { %427 = vtanh.f32 %v168_v48  ;;  %v206_v54 = vmul.f32 %v424_v51, %v583_v33  ;;  %v161_v55 = vadd.f32 %v576_v28, %v160_v50  ;;  %v426_v56 = vpop.eup %425  ;;  %v300_v48 = vadd.s32 4294967264, %v615_v39 }
  0xad   :  { %429 = vtanh.f32 %v151_v52  ;;  %v210_v62 = vmul.f32 %v426_v56, %v583_v33 }
  0xae   :  { %223 = vadd.xlane.f32.xlu0 %v206_v54  ;;  %431 = vtanh.f32 %v161_v55  ;;  %v304_v54 = vadd.s32 4294967256, %v615_v39 }
  0xaf   :  { %237 = vadd.xlane.f32.xlu2 %v213_v53 }
  0xb1   :  { %v170_v57 = vpop.f32.mrf.mxu2  ;;  %v180_v58 = vpop.f32.mrf.mxu3 }
  0xb2   :  { %v428_v59 = vpop.eup %427  ;;  %v171_v60 = vadd.f32 %v576_v28, %v170_v57  ;;  %v152_v63 = vpop.f32.mrf.mxu0  ;;  %v181_v12 = vadd.f32 %v576_v28, %v180_v58 }
  0xb3   :  { %v430_v61 = vpop.eup %429  ;;  %v214_v1 = vmul.f32 %v428_v59, %v583_v33  ;;  %v153_v4 = vadd.f32 %v576_v28, %v152_v63  ;;  %v162_v11 = vpop.f32.mrf.mxu1 }
  0xb4   :  { %433 = vtanh.f32 %v171_v60  ;;  %v207_v0 = vmul.f32 %v430_v61, %v583_v33  ;;  %v432_v3 = vpop.eup %431  ;;  %v163_v14 = vadd.f32 %v576_v28, %v162_v11  ;;  %v324_v11 = vadd.s32 4294967216, %v615_v39 }
  0xb5   :  { %435 = vtanh.f32 %v176_v2  ;;  %v211_v8 = vmul.f32 %v432_v3, %v583_v33  ;;  %v312_v3 = vadd.s32 4294967240, %v615_v39 }
  0xb6   :  { %225 = vadd.xlane.f32.xlu1 %v207_v0  ;;  %239 = vadd.xlane.f32.xlu0 %v214_v1  ;;  %437 = vtanh.f32 %v153_v4  ;;  %v316_v4 = vadd.s32 4294967232, %v615_v39 }
  0xb7   :  { %231 = vadd.xlane.f32.xlu2 %v210_v62  ;;  %v308_v62 = vadd.s32 4294967248, %v615_v39 }
  0xb9   :  { %v172_v5 = vpop.f32.mrf.mxu2  ;;  %v182_v9 = vpop.f32.mrf.mxu3 }
  0xba   :  { %v434_v6 = vpop.eup %433  ;;  %v173_v7 = vadd.f32 %v576_v28, %v172_v5  ;;  %v183_v13 = vadd.f32 %v576_v28, %v182_v9 }
  0xbb   :  { %v215_v10 = vmul.f32 %v434_v6, %v583_v33  ;;  %v436_v15 = vpop.eup %435  ;;  %v320_v6 = vadd.s32 4294967224, %v615_v39 }
  0xbc   :  { %439 = vtanh.f32 %v173_v7  ;;  %v438_v16 = vpop.eup %437  ;;  %v217_v20 = vmul.f32 %v436_v15, %v583_v33 }
  0xbd   :  { %441 = vtanh.f32 %v181_v12  ;;  %v208_v19 = vmul.f32 %v438_v16, %v583_v33 }
  0xbe   :  { %241 = vadd.xlane.f32.xlu1 %v215_v10  ;;  %233 = vadd.xlane.f32.xlu0 %v211_v8  ;;  %443 = vtanh.f32 %v183_v13 }
  0xbf   :  { %445 = vtanh.f32 %v163_v14  ;;  %v328_v14 = vadd.s32 4294967208, %v615_v39 }
  0xc0   :  { %447 = vtanh.f32 %v178_v23 }
  0xc2   :  { %v440_v17 = vpop.eup %439 }
  0xc3   :  { %v216_v18 = vmul.f32 %v440_v17, %v583_v33  ;;  %v442_v21 = vpop.eup %441 }
  0xc4   :  { %v444_v22 = vpop.eup %443  ;;  %v219_v25 = vmul.f32 %v442_v21, %v583_v33 }
  0xc5   :  { %243 = vadd.xlane.f32.xlu2 %v216_v18  ;;  %v446_v24 = vpop.eup %445  ;;  %v220_v26 = vmul.f32 %v444_v22, %v583_v33 }
  0xc6   :  { %227 = vadd.xlane.f32.xlu1 %v208_v19  ;;  %245 = vadd.xlane.f32.xlu0 %v217_v20  ;;  %v212_v27 = vmul.f32 %v446_v24, %v583_v33  ;;  %v448_v29 = vpop.eup %447  ;;  %v332_v20 = vadd.s32 4294967200, %v615_v39 }
  0xc7   :  { %v218_v30 = vmul.f32 %v448_v29, %v583_v33 }
  0xcd   :  { %249 = vadd.xlane.f32.xlu2 %v219_v25 }
  0xce   :  { %235 = vadd.xlane.f32.xlu1 %v212_v27  ;;  %251 = vadd.xlane.f32.xlu0 %v220_v26 }
  0xd6   :  { %247 = vadd.xlane.f32.xlu1 %v218_v30  ;;  %v336_v30 = vadd.s32 4294967192, %v615_v39 }
 0x119   :  { %v222_v31 = vpop.xlane.xlu0 %221 }
 0x11a   :  { %v230_v34 = vpop.xlane.xlu2 %229  ;;  %v253_v45 = vadd.f32 96.0, %v222_v31  ;;  %v340_v31 = vadd.s32 4294967184, %v615_v39 }
 0x11b   :  { %v257_v49 = vadd.f32 96.0, %v230_v34  ;;  %v344_v34 = vadd.s32 4294967176, %v615_v39 }
 0x11c   :  { %v287_v52 = vperm.slane %v253_v45, %v615_v39 }
 0x11d   :  { %v301_v58 = vperm.slane %v257_v49, %v300_v48 }
 0x121   :  { %v224_v32 = vpop.xlane.xlu0 %223 }
 0x122   :  { %v238_v36 = vpop.xlane.xlu2 %237  ;;  %v254_v41 = vadd.f32 96.0, %v224_v32 }
 0x123   :  { %v261_v5 = vadd.f32 96.0, %v238_v36 }
 0x124   :  { %v289_v46 = vperm.slane %v254_v41, %v288_v40 }
 0x125   :  { %v317_v17 = vperm.slane %v261_v5, %v316_v4 }
 0x126   :  { %v291_v55 = vsel %vm290_vm1, %v289_v46, %v287_v52 }
 0x129   :  { %v226_v35 = vpop.xlane.xlu1 %225  ;;  %v240_v28 = vpop.xlane.xlu0 %239 }
 0x12a   :  { %v255_v43 = vadd.f32 96.0, %v226_v35  ;;  %v232_v33 = vpop.xlane.xlu2 %231  ;;  %v262_v8 = vadd.f32 96.0, %v240_v28 }
 0x12b   :  { %v258_v56 = vadd.f32 96.0, %v232_v33 }
 0x12c   :  { %v293_v50 = vperm.slane %v255_v43, %v292_v42  ;;  %v321_v19 = vperm.slane %v262_v8, %v320_v6 }
 0x12d   :  { %v305_v2 = vperm.slane %v258_v56, %v304_v54 }
 0x12e   :  { %v295_v59 = vsel %vm294_vm2, %v293_v50, %v291_v55 }
 0x131   :  { %v242_v38 = vpop.xlane.xlu1 %241  ;;  %v234_v44 = vpop.xlane.xlu0 %233 }
 0x132   :  { %v259_v63 = vadd.f32 96.0, %v234_v44  ;;  %v263_v12 = vadd.f32 96.0, %v242_v38 }
 0x134   :  { %v309_v13 = vperm.slane %v259_v63, %v308_v62  ;;  %v325_v23 = vperm.slane %v263_v12, %v324_v11 }
 0x138   :  { %v244_v60 = vpop.xlane.xlu2 %243 }
 0x139   :  { %v228_v51 = vpop.xlane.xlu1 %227  ;;  %v246_v1 = vpop.xlane.xlu0 %245  ;;  %v264_v15 = vadd.f32 96.0, %v244_v60 }
 0x13a   :  { %v256_v53 = vadd.f32 96.0, %v228_v51  ;;  %v265_v24 = vadd.f32 96.0, %v246_v1 }
 0x13b   :  { %v329_v27 = vperm.slane %v264_v15, %v328_v14 }
 0x13c   :  { %v297_v57 = vperm.slane %v256_v53, %v296_v47  ;;  %v333_v40 = vperm.slane %v265_v24, %v332_v20 }
 0x13e   :  { %v299_v61 = vsel %vm298_vm3, %v297_v57, %v295_v59 }
 0x13f   :  { %v303_v0 = vsel %vm302_vm4, %v301_v58, %v299_v61 }
 0x140   :  { %v307_v10 = vsel %vm306_vm5, %v305_v2, %v303_v0  ;;  %v250_v22 = vpop.xlane.xlu2 %249 }
 0x141   :  { %v236_v7 = vpop.xlane.xlu1 %235  ;;  %v311_v18 = vsel %vm310_vm6, %v309_v13, %v307_v10  ;;  %v252_v26 = vpop.xlane.xlu0 %251  ;;  %v267_v32 = vadd.f32 96.0, %v250_v22 }
 0x142   :  { %v260_v9 = vadd.f32 96.0, %v236_v7  ;;  %v268_v36 = vadd.f32 96.0, %v252_v26 }
 0x143   :  { %v341_v42 = vperm.slane %v267_v32, %v340_v31 }
 0x144   :  { %v313_v16 = vperm.slane %v260_v9, %v312_v3  ;;  %v345_v39 = vperm.slane %v268_v36, %v344_v34 }
 0x146   :  { %v315_v21 = vsel %vm314_vm7, %v313_v16, %v311_v18 }
 0x147   :  { %v319_v25 = vsel %vm318_vm8, %v317_v17, %v315_v21 }
 0x148   :  { %v323_v29 = vsel %vm322_vm9, %v321_v19, %v319_v25 }
 0x149   :  { %v248_v35 = vpop.xlane.xlu1 %247  ;;  %v327_v28 = vsel %vm326_vm10, %v325_v23, %v323_v29 }
 0x14a   :  { %v266_v37 = vadd.f32 96.0, %v248_v35  ;;  %v331_v38 = vsel %vm330_vm11, %v329_v27, %v327_v28 }
 0x14b   :  { %v335_v43 = vsel %vm334_vm12, %v333_v40, %v331_v38 }
 0x14c   :  { %v337_v41 = vperm.slane %v266_v37, %v336_v30 }
 0x14e   :  { %v339_v44 = vsel %vm338_vm13, %v337_v41, %v335_v43 }
 0x14f   :  { %v343_v45 = vsel %vm342_vm14, %v341_v42, %v339_v44 }
 0x150   :  { %v347_v33 = vsel %vm346_vm15, %v345_v39, %v343_v45 }
 0x151   :  { %349 = vst [vmem:[#allocation7] sm:$0x1] %v347_v33 }
 0x152   :  { %360 = dma.vmem_to_hbm [thread:$0]  %s356_s3, 16, %s358_s7, [#allocation4]  }
 0x153   :  { %525 = dma.done.wait [#allocation4], 16  }
 0x154   :  { %526 = vsyncadd [#allocation4], 4294967280 }
 0x155   :  { %365 = vsyncpa [#allocation3], 1 }
 0x156   :  { %366 = vsyncpa [#allocation6], 1 }
 0x157   :  { %367 = vsyncpa [#allocation4], 1 }

</bundles_post_ra>
